<compile_context>
chip_gen: v5e
topology: v5e:2x2
jax: 0.10.0
libtpu: 0.0.40
codegen_flags: <defaults>
</compile_context>

<pallas_src>
import jax
import jax.numpy as jnp
from jax.experimental import pallas as pl
from jax.experimental.pallas import tpu as pltpu

FEATURE_DIM = 768      # CLIP ViT-L/14 image embedding dim
NUM_CLASSES = 2
LANE = 128             # MXU / lane width


def _round_up(x, m):
    return ((x + m - 1) // m) * m


def _tpu_kind():
    try:
        return jax.devices()[0].device_kind.lower()
    except Exception:
        return ""


def _linear_kernel(x_ref, w_ref, b_ref, o_ref):
    # x_ref : (TB, D)      VMEM  pipelined feature tile (f32 or bf16)
    # w_ref : (D, C_PAD)   VMEM  resident zero-padded weight.T
    # b_ref : (1, C)       VMEM  bias
    # o_ref : (TB, C)      VMEM  unpadded logits tile
    acc = jnp.dot(x_ref[...], w_ref[...], preferred_element_type=jnp.float32)
    c = o_ref.shape[-1]
    o_ref[...] = acc[:, :c] + b_ref[...]


def clip_linear_head(features, weight, bias, *, tb=None, compute_dtype=jnp.float32):
    """Pallas implementation of `self.classifier(self.dropout(features))`.

    features : (B, 768) float32  -- output of clip_model.encode_image(x).float()
    weight   : (C, 768) float32  -- nn.Linear weight (PyTorch convention)
    bias     : (C,)     float32  -- nn.Linear bias
    returns  : (B, C)   float32  -- logits
    """
    B, D = features.shape
    C = weight.shape[0]
    assert D == weight.shape[1]

    kind = _tpu_kind()
    if tb is None:
        # 2048-row tiles fit the 32 MiB scoped-VMEM default on v6e/v7x;
        # stay at 1024 on v5e (16 MiB default) / unknown backends.
        tb = 2048 if ("v6" in kind or "v7" in kind) else 1024

    # v7x megacore: make sure the grid has >= 2 steps so both TensorCores work.
    if "v7" in kind and B >= 16:
        tb = min(tb, _round_up(pl.cdiv(B, 2), 8))

    tb_eff = min(_round_up(tb, 8), _round_up(B, 8))
    if tb_eff > B:
        tb_eff = B          # tiny batch: full-dim block (no padding needed)
    grid = (pl.cdiv(B, tb_eff),)   # ragged last tile handled by Pallas masking

    feats = features.astype(compute_dtype)

    # Lane-dense, zero-padded weight (tiny; resident in VMEM across the grid).
    c_pad = _round_up(max(C, 1), LANE)
    w_pad = (jnp.zeros((D, c_pad), compute_dtype)
             .at[:, :C].set(weight.T.astype(compute_dtype)))
    b2 = bias.astype(jnp.float32).reshape(1, C)

    itemsize = jnp.dtype(compute_dtype).itemsize
    cost = pl.CostEstimate(
        flops=2 * B * D * c_pad,
        transcendentals=0,
        bytes_accessed=B * D * itemsize + D * c_pad * itemsize + B * C * 4 + C * 4,
    )

    # Dropout(p=0.1) is identity at inference time (model.eval()).
    out = pl.pallas_call(
        _linear_kernel,
        out_shape=jax.ShapeDtypeStruct((B, C), jnp.float32),
        grid_spec=pl.GridSpec(
            grid=grid,
            in_specs=[
                pl.BlockSpec((tb_eff, D), lambda i: (i, 0)),   # pipelined features
                pl.BlockSpec((D, c_pad), lambda i: (0, 0)),    # resident weight
                pl.BlockSpec((1, C), lambda i: (0, 0)),        # resident bias
            ],
            out_specs=pl.BlockSpec((tb_eff, C), lambda i: (i, 0)),
        ),
        compiler_params=pltpu.CompilerParams(
            dimension_semantics=("parallel",),
        ),
        cost_estimate=cost,
    )(feats, w_pad, b2)

    return out


def init_classifier_params(key, in_dim=FEATURE_DIM, out_dim=NUM_CLASSES):
    """Deterministic init matching nn.Linear default: U(-1/sqrt(in), 1/sqrt(in))."""
    k_w, k_b = jax.random.split(key)
    bound = 1.0 / (in_dim ** 0.5)
    weight = jax.random.uniform(k_w, (out_dim, in_dim), jnp.float32, -bound, bound)
    bias = jax.random.uniform(k_b, (out_dim,), jnp.float32, -bound, bound)
    return weight, bias


if __name__ == "__main__":
    key = jax.random.PRNGKey(0)
    k_feat, k_feat2, k_params = jax.random.split(key, 3)

    weight, bias = init_classifier_params(k_params)

    # Stand-in for `clip_model.encode_image(x).float()` output at batch=2.
    B = 2
    features = jax.random.normal(k_feat, (B, FEATURE_DIM), dtype=jnp.float32)
    ref = features @ weight.T + bias

    # f32 path (exact module semantics).
    logits = jax.block_until_ready(clip_linear_head(features, weight, bias))
    assert logits.shape == (B, NUM_CLASSES)
    assert jnp.allclose(logits, ref, atol=1e-5, rtol=1e-5)

    # bf16-feature fast path (halves the dominant HBM read; f32 MXU accumulate).
    logits_bf16 = jax.block_until_ready(
        clip_linear_head(features, weight, bias, compute_dtype=jnp.bfloat16))
    assert jnp.allclose(logits_bf16, ref, atol=5e-2, rtol=5e-2)

    # Multi-step grid with a ragged last tile (no feature padding performed).
    B2 = 200
    feats2 = jax.random.normal(k_feat2, (B2, FEATURE_DIM), dtype=jnp.float32)
    ref2 = feats2 @ weight.T + bias
    logits2 = jax.block_until_ready(clip_linear_head(feats2, weight, bias, tb=128))
    assert logits2.shape == (B2, NUM_CLASSES)
    assert jnp.allclose(logits2, ref2, atol=1e-5, rtol=1e-5)

    print("KERNEL_OK")
</pallas_src>

<mosaic_0001>
module attributes {stable_mosaic.version = 11 : i64} {
  func.func @_linear_kernel(%arg0: i32, %arg1: memref<2x768xf32, #tpu.memory_space<vmem>>, %arg2: memref<768x128xf32, #tpu.memory_space<vmem>>, %arg3: memref<1x2xf32, #tpu.memory_space<vmem>>, %arg4: memref<2x2xf32, #tpu.memory_space<vmem>>) attributes {dimension_semantics = [#tpu.dimension_semantics<parallel>], iteration_bounds = array<i64: 1>, scalar_prefetch = 0 : i64, scratch_operands = 0 : i64, tpu.core_type = #tpu.core_type<tc>, window_params = [{transform_indices = @transform_0, window_bounds = array<i64: 2, 768>}, {pipeline_mode = #tpu.pipeline_mode<synchronous>, transform_indices = @transform_1, window_bounds = array<i64: 768, 128>}, {pipeline_mode = #tpu.pipeline_mode<synchronous>, transform_indices = @transform_2, window_bounds = array<i64: 1, 2>}, {transform_indices = @transform_3, window_bounds = array<i64: 2, 2>}]} {
    %c0 = arith.constant 0 : index
    %c0_0 = arith.constant 0 : index
    %0 = vector.load %arg1[%c0, %c0_0] : memref<2x768xf32, #tpu.memory_space<vmem>>, vector<2x768xf32>
    %c0_1 = arith.constant 0 : index
    %c0_2 = arith.constant 0 : index
    %1 = vector.load %arg2[%c0_1, %c0_2] : memref<768x128xf32, #tpu.memory_space<vmem>>, vector<768x128xf32>
    %cst = arith.constant dense<0.000000e+00> : vector<2x128xf32>
    %2 = tpu.matmul %0, %1, %cst {dimension_numbers = #tpu.dot_dimension_numbers<[1], [0], [0], [1], [0, 0, 1, 1], [], []>} : vector<2x768xf32>, vector<768x128xf32>, vector<2x128xf32> -> vector<2x128xf32>
    %3 = vector.extract_strided_slice %2 {offsets = [0, 0], sizes = [2, 2], strides = [1, 1]} : vector<2x128xf32> to vector<2x2xf32>
    %c0_3 = arith.constant 0 : index
    %c0_4 = arith.constant 0 : index
    %4 = vector.load %arg3[%c0_3, %c0_4] : memref<1x2xf32, #tpu.memory_space<vmem>>, vector<1x2xf32>
    %5 = vector.broadcast %4 : vector<1x2xf32> to vector<2x2xf32>
    %6 = arith.addf %3, %5 : vector<2x2xf32>
    %c0_5 = arith.constant 0 : index
    %c0_6 = arith.constant 0 : index
    %7 = vector.load %arg4[%c0_5, %c0_6] : memref<2x2xf32, #tpu.memory_space<vmem>>, vector<2x2xf32>
    tpu.vector_store %arg4[%c0_5, %c0_6], %6 {strides = array<i32>} : memref<2x2xf32, #tpu.memory_space<vmem>>, vector<2x2xf32>,
    return
  }
  func.func @transform_0(%arg0: i32) -> (i32, i32) {
    %c0_i32 = arith.constant 0 : i32
    %c0_i32_0 = arith.constant 0 : i32
    return %arg0, %c0_i32 : i32, i32
  }
  func.func @transform_1(%arg0: i32) -> (i32, i32) {
    %c0_i32 = arith.constant 0 : i32
    %c0_i32_0 = arith.constant 0 : i32
    %c0_i32_1 = arith.constant 0 : i32
    return %c0_i32, %c0_i32_0 : i32, i32
  }
  func.func @transform_2(%arg0: i32) -> (i32, i32) {
    %c0_i32 = arith.constant 0 : i32
    %c0_i32_0 = arith.constant 0 : i32
    %c0_i32_1 = arith.constant 0 : i32
    return %c0_i32, %c0_i32_0 : i32, i32
  }
  func.func @transform_3(%arg0: i32) -> (i32, i32) {
    %c0_i32 = arith.constant 0 : i32
    %c0_i32_0 = arith.constant 0 : i32
    return %arg0, %c0_i32 : i32, i32
  }
}

</mosaic_0001>

<bundles_post_ra>
// kernel: tpu_custom_call.1
= control target key start
LH: loop header
LB: loop body
LE: loop exit
PB: predicated region body
PF: predicated region fallthrough
CT: control target
= control target key end

     0   :  { %8 = vsyncpa [#allocation3], 0  ;;  %s426_s0 = inlined_call_operand.hbm [shape: f32[2,768], index: 0, kind: input, shape index: {}]   ;;  %s427_s1 = inlined_call_operand.hbm [shape: f32[768,128], index: 1, kind: input, shape index: {}]   ;;  %s428_s2 = inlined_call_operand.vmem [shape: f32[1,2], index: 2, kind: input, shape index: {}]   ;;  %s429_s3 = inlined_call_operand.hbm [shape: f32[2,2], index: 3, kind: output, shape index: {}]  }
   0x1   :  { %9 = vsyncpa [#allocation6], 0 }
   0x2   :  { %10 = vsyncpa [#allocation4], 0  ;;  %s16_s14 = sshll.u32 %s426_s0, 4  ;;  %s389_s15 = smov [#allocation2]   ;;  %s17_s14 = int_to_ptr.hbm [resolvable:$true] %s16_s14 }
   0x3   :  { %s18_s16 = sshll.u32 %s389_s15, 4  ;;  %s26_s19 = sshll.u32 %s427_s1, 4  ;;  %s19_s16 = int_to_ptr.vmem [resolvable:$true] %s18_s16  ;;  %s27_s19 = int_to_ptr.hbm [resolvable:$true] %s26_s19 }
   0x4   :  { %21 = dma.hbm_to_vmem [thread:$0]  %s17_s14, 192, %s19_s16, [#allocation3]  }
   0x5   :  { %s390_s20 = smov [#allocation5]   ;;  %s391_s22 = smov 128  }
   0x6   :  { %s28_s21 = sshll.u32 %s390_s20, 4  ;;  %s392_s23 = smov 8   ;;  %s29_s21 = int_to_ptr.vmem [resolvable:$true] %s28_s21 }
   0x7   :  { %34 = dma.hbm_to_vmem [thread:$0]  %s27_s19, 12288, %s29_s21, [#allocation6], %s391_s22, %s391_s22, %s392_s23  }
   0x8   :  { %383 = dma.done.wait [#allocation3], 192  }
   0x9   :  { %384 = vsyncadd [#allocation3], 4294967104 }
   0xa   :  { %385 = dma.done.wait [#allocation6], 12288  }
   0xb   :  { %386 = vsyncadd [#allocation6], 4294955008  ;;  %v62_v0 = vld [vmem:[#allocation5 + $0x78] sm:$0xff]  ;;  %v61_v1 = vld [vmem:[#allocation5 + $0x70] sm:$0xff]  ;;  %s393_s24 = smov [#allocation7]   ;;  %s294_s28 = sshll.u32 %s429_s3, 4  ;;  %s295_s28 = int_to_ptr.hbm [resolvable:$true] %s294_s28 }
   0xc   :  { %v78_v2 = vld [vmem:[#allocation5 + $0xf8] sm:$0xff]  ;;  %160 = vmatpush.msra.mxu0 %v62_v0  ;;  %v77_v3 = vld [vmem:[#allocation5 + $0xf0] sm:$0xff]  ;;  %v60_v4 = vld [vmem:[#allocation5 + $0x68] sm:$0xff]  ;;  %s292_s25 = sshll.u32 %s393_s24, 4  ;;  %vm285_vm0 = vcmask 9216   ;;  %s293_s25 = int_to_ptr.vmem [resolvable:$true] %s292_s25 }
   0xd   :  { %180 = vmatpush.msra.mxu1 %v78_v2  ;;  %v76_v5 = vld [vmem:[#allocation5 + $0xe8] sm:$0xff]  ;;  %v59_v6 = vld [vmem:[#allocation5 + $0x60] sm:$0xff]  ;;  %v58_v8 = vld [vmem:[#allocation5 + $0x58] sm:$0xff] }
   0xe   :  { %161 = vmatpush.msra.mxu0 %v61_v1  ;;  %v75_v7 = vld [vmem:[#allocation5 + $0xe0] sm:$0xff]  ;;  %v74_v9 = vld [vmem:[#allocation5 + $0xd8] sm:$0xff]  ;;  %v93_v11 = vld [vmem:[#allocation5 + $0x170] sm:$0xff] }
   0xf   :  { %181 = vmatpush.msra.mxu1 %v77_v3  ;;  %v94_v10 = vld [vmem:[#allocation5 + $0x178] sm:$0xff]  ;;  %v57_v13 = vld [vmem:[#allocation5 + $0x50] sm:$0xff]  ;;  %v92_v15 = vld [vmem:[#allocation5 + $0x168] sm:$0xff] }
  0x10   :  { %162 = vmatpush.msra.mxu0 %v60_v4  ;;  %v110_v12 = vld [vmem:[#allocation5 + $0x1f8] sm:$0xff]  ;;  %v73_v14 = vld [vmem:[#allocation5 + $0xd0] sm:$0xff]  ;;  %200 = vmatpush.msra.mxu2 %v94_v10  ;;  %v56_v17 = vld [vmem:[#allocation5 + $0x48] sm:$0xff] }
  0x11   :  { %182 = vmatpush.msra.mxu1 %v76_v5  ;;  %220 = vmatpush.msra.mxu3 %v110_v12  ;;  %v109_v16 = vld [vmem:[#allocation5 + $0x1f0] sm:$0xff]  ;;  %v72_v18 = vld [vmem:[#allocation5 + $0xc8] sm:$0xff]  ;;  %v91_v20 = vld [vmem:[#allocation5 + $0x160] sm:$0xff] }
  0x12   :  { %163 = vmatpush.msra.mxu0 %v59_v6  ;;  %201 = vmatpush.msra.mxu2 %v93_v11  ;;  %v108_v19 = vld [vmem:[#allocation5 + $0x1e8] sm:$0xff]  ;;  %v107_v21 = vld [vmem:[#allocation5 + $0x1e0] sm:$0xff]  ;;  %v90_v24 = vld [vmem:[#allocation5 + $0x158] sm:$0xff] }
  0x13   :  { %183 = vmatpush.msra.mxu1 %v75_v7  ;;  %221 = vmatpush.msra.mxu3 %v109_v16  ;;  %v55_v22 = vld [vmem:[#allocation5 + $0x40] sm:$0xff]  ;;  %v106_v25 = vld [vmem:[#allocation5 + $0x1d8] sm:$0xff]  ;;  %v89_v28 = vld [vmem:[#allocation5 + $0x150] sm:$0xff] }
  0x14   :  { %164 = vmatpush.msra.mxu0 %v58_v8  ;;  %v71_v23 = vld [vmem:[#allocation5 + $0xc0] sm:$0xff]  ;;  %202 = vmatpush.msra.mxu2 %v92_v15  ;;  %v54_v26 = vld [vmem:[#allocation5 + $0x38] sm:$0xff]  ;;  %v105_v29 = vld [vmem:[#allocation5 + $0x1d0] sm:$0xff] }
  0x15   :  { %184 = vmatpush.msra.mxu1 %v74_v9  ;;  %222 = vmatpush.msra.mxu3 %v108_v19  ;;  %v70_v27 = vld [vmem:[#allocation5 + $0xb8] sm:$0xff]  ;;  %v53_v30 = vld [vmem:[#allocation5 + $0x30] sm:$0xff]  ;;  %v88_v32 = vld [vmem:[#allocation5 + $0x148] sm:$0xff] }
  0x16   :  { %165 = vmatpush.msra.mxu0 %v57_v13  ;;  %203 = vmatpush.msra.mxu2 %v91_v20  ;;  %v69_v31 = vld [vmem:[#allocation5 + $0xb0] sm:$0xff]  ;;  %v104_v33 = vld [vmem:[#allocation5 + $0x1c8] sm:$0xff]  ;;  %v87_v36 = vld [vmem:[#allocation5 + $0x140] sm:$0xff] }
  0x17   :  { %185 = vmatpush.msra.mxu1 %v73_v14  ;;  %223 = vmatpush.msra.mxu3 %v107_v21  ;;  %v52_v34 = vld [vmem:[#allocation5 + $0x28] sm:$0xff]  ;;  %v103_v37 = vld [vmem:[#allocation5 + $0x1c0] sm:$0xff]  ;;  %v86_v40 = vld [vmem:[#allocation5 + $0x138] sm:$0xff] }
  0x18   :  { %166 = vmatpush.msra.mxu0 %v56_v17  ;;  %204 = vmatpush.msra.mxu2 %v90_v24  ;;  %v68_v35 = vld [vmem:[#allocation5 + $0xa8] sm:$0xff]  ;;  %v51_v38 = vld [vmem:[#allocation5 + $0x20] sm:$0xff]  ;;  %v102_v41 = vld [vmem:[#allocation5 + $0x1b8] sm:$0xff] }
  0x19   :  { %186 = vmatpush.msra.mxu1 %v72_v18  ;;  %224 = vmatpush.msra.mxu3 %v106_v25  ;;  %v67_v39 = vld [vmem:[#allocation5 + $0xa0] sm:$0xff]  ;;  %v50_v42 = vld [vmem:[#allocation5 + $0x18] sm:$0xff]  ;;  %v85_v44 = vld [vmem:[#allocation5 + $0x130] sm:$0xff] }
  0x1a   :  { %167 = vmatpush.msra.mxu0 %v55_v22  ;;  %205 = vmatpush.msra.mxu2 %v89_v28  ;;  %v66_v43 = vld [vmem:[#allocation5 + $0x98] sm:$0xff]  ;;  %v101_v45 = vld [vmem:[#allocation5 + $0x1b0] sm:$0xff]  ;;  %v84_v48 = vld [vmem:[#allocation5 + $0x128] sm:$0xff] }
  0x1b   :  { %187 = vmatpush.msra.mxu1 %v71_v23  ;;  %225 = vmatpush.msra.mxu3 %v105_v29  ;;  %v49_v46 = vld [vmem:[#allocation5 + $0x10] sm:$0xff]  ;;  %v100_v49 = vld [vmem:[#allocation5 + $0x1a8] sm:$0xff]  ;;  %v83_v52 = vld [vmem:[#allocation5 + $0x120] sm:$0xff] }
  0x1c   :  { %168 = vmatpush.msra.mxu0 %v54_v26  ;;  %206 = vmatpush.msra.mxu2 %v88_v32  ;;  %v65_v47 = vld [vmem:[#allocation5 + $0x90] sm:$0xff]  ;;  %v48_v50 = vld [vmem:[#allocation5 + $0x8] sm:$0xff]  ;;  %v99_v53 = vld [vmem:[#allocation5 + $0x1a0] sm:$0xff] }
  0x1d   :  { %188 = vmatpush.msra.mxu1 %v70_v27  ;;  %226 = vmatpush.msra.mxu3 %v104_v33  ;;  %v64_v51 = vld [vmem:[#allocation5 + $0x88] sm:$0xff]  ;;  %v45_v54 = vld [vmem:[#allocation2] sm:$0xff]  ;;  %v47_v55 = vld [vmem:[#allocation5] sm:$0xff] }
  0x1e   :  { %169 = vmatpush.msra.mxu0 %v53_v30  ;;  %207 = vmatpush.msra.mxu2 %v87_v36  ;;  %v63_v56 = vld [vmem:[#allocation5 + $0x80] sm:$0xff]  ;;  %145 = vst [vmem:[#allocation1] ss:$4 sm:$0xff] %v45_v54  ;;  %v126_v57 = vld [vmem:[#allocation5 + $0x278] sm:$0xff]  ;;  %v125_v61 = vld [vmem:[#allocation5 + $0x270] sm:$0xff] }
  0x1f   :  { %189 = vmatpush.msra.mxu1 %v69_v31  ;;  %227 = vmatpush.msra.mxu3 %v103_v37  ;;  %v142_v58 = vld [vmem:[#allocation5 + $0x2f8] sm:$0xff]  ;;  %v141_v62 = vld [vmem:[#allocation5 + $0x2f0] sm:$0xff]  ;;  %v124_v2 = vld [vmem:[#allocation5 + $0x268] sm:$0xff] }
  0x20   :  { %170 = vmatpush.msra.mxu0 %v52_v34  ;;  %208 = vmatpush.msra.mxu2 %v86_v40  ;;  %v82_v59 = vld [vmem:[#allocation5 + $0x118] sm:$0xff]  ;;  %v81_v63 = vld [vmem:[#allocation5 + $0x110] sm:$0xff]  ;;  %v140_v3 = vld [vmem:[#allocation5 + $0x2e8] sm:$0xff] }
  0x21   :  { %190 = vmatpush.msra.mxu1 %v68_v35  ;;  %228 = vmatpush.msra.mxu3 %v102_v41  ;;  %v98_v60 = vld [vmem:[#allocation5 + $0x198] sm:$0xff]  ;;  %v97_v0 = vld [vmem:[#allocation5 + $0x190] sm:$0xff]  ;;  %v80_v4 = vld [vmem:[#allocation5 + $0x108] sm:$0xff] }
  0x22   :  { %171 = vmatpush.msra.mxu0 %v51_v38  ;;  %209 = vmatpush.msra.mxu2 %v85_v44  ;;  %v46_v1 = vld [vmem:[#allocation2 + $0x8] sm:$0xf]  ;;  %v96_v5 = vld [vmem:[#allocation5 + $0x188] sm:$0xff]  ;;  %v123_v6 = vld [vmem:[#allocation5 + $0x260] sm:$0xff] }
  0x23   :  { %191 = vmatpush.msra.mxu1 %v67_v39  ;;  %229 = vmatpush.msra.mxu3 %v101_v45  ;;  %147 = vst [vmem:[#allocation1 + $0x20] ss:$4 sm:$0xff] %v46_v1  ;;  %v139_v7 = vld [vmem:[#allocation5 + $0x2e0] sm:$0xff]  ;;  %v122_v10 = vld [vmem:[#allocation5 + $0x258] sm:$0xff]  ;;  %v121_v14 = vld [vmem:[#allocation5 + $0x250] sm:$0xff] }
  0x24   :  { %172 = vmatpush.msra.mxu0 %v50_v42  ;;  %210 = vmatpush.msra.mxu2 %v84_v48  ;;  %v79_v8 = vld [vmem:[#allocation5 + $0x100] sm:$0xff]  ;;  %v138_v11 = vld [vmem:[#allocation5 + $0x2d8] sm:$0xff]  ;;  %v137_v15 = vld [vmem:[#allocation5 + $0x2d0] sm:$0xff] }
  0x25   :  { %192 = vmatpush.msra.mxu1 %v66_v43  ;;  %230 = vmatpush.msra.mxu3 %v100_v49  ;;  %v95_v9 = vld [vmem:[#allocation5 + $0x180] sm:$0xff]  ;;  %v148_v16 = vld.sshfl [vmem:[#allocation1] sm:$0xff pattern:$0x73625140]  ;;  %v118_v22 = vld [vmem:[#allocation5 + $0x238] sm:$0xff] }
  0x26   :  { %173 = vmatpush.msra.mxu0 %v49_v46  ;;  %211 = vmatpush.msra.mxu2 %v83_v52  ;;  %v150_v12 = vld.sshfl [vmem:[#allocation1 + $0x10] sm:$0xff pattern:$0x73625140]  ;;  %v151_v13 = vld.sshfl [vmem:[#allocation1 + $0x18] sm:$0xff pattern:$0x73625140] }
  0x27   :  { %193 = vmatpush.msra.mxu1 %v65_v47  ;;  %231 = vmatpush.msra.mxu3 %v99_v53  ;;  %v149_v17 = vld.sshfl [vmem:[#allocation1 + $0x8] sm:$0xff pattern:$0x73625140]  ;;  %v120_v18 = vld [vmem:[#allocation5 + $0x248] sm:$0xff]  ;;  %v119_v20 = vld [vmem:[#allocation5 + $0x240] sm:$0xff] }
  0x28   :  { %174 = vmatpush.msra.mxu0 %v48_v50  ;;  %212 = vmatpush.msra.mxu2 %v82_v59  ;;  %v136_v19 = vld [vmem:[#allocation5 + $0x2c8] sm:$0xff]  ;;  %v135_v21 = vld [vmem:[#allocation5 + $0x2c0] sm:$0xff]  ;;  %v134_v23 = vld [vmem:[#allocation5 + $0x2b8] sm:$0xff] }
  0x29   :  { %194 = vmatpush.msra.mxu1 %v64_v51  ;;  %232 = vmatpush.msra.mxu3 %v98_v60  ;;  %v117_v24 = vld [vmem:[#allocation5 + $0x230] sm:$0xff]  ;;  %v116_v26 = vld [vmem:[#allocation5 + $0x228] sm:$0xff]  ;;  %v115_v28 = vld [vmem:[#allocation5 + $0x220] sm:$0xff] }
  0x2a   :  { %175 = vmatpush.msra.mxu0 %v47_v55  ;;  %213 = vmatpush.msra.mxu2 %v81_v63  ;;  %v133_v25 = vld [vmem:[#allocation5 + $0x2b0] sm:$0xff]  ;;  %v132_v27 = vld [vmem:[#allocation5 + $0x2a8] sm:$0xff]  ;;  %v131_v29 = vld [vmem:[#allocation5 + $0x2a0] sm:$0xff] }
  0x2b   :  { %195 = vmatpush.msra.mxu1 %v63_v56  ;;  %233 = vmatpush.msra.mxu3 %v97_v0  ;;  %v114_v30 = vld [vmem:[#allocation5 + $0x218] sm:$0xff]  ;;  %v113_v32 = vld [vmem:[#allocation5 + $0x210] sm:$0xff]  ;;  %v112_v34 = vld [vmem:[#allocation5 + $0x208] sm:$0xff] }
  0x2c   :  { %240 = vmatpush.msrb.mxu0 %v126_v57  ;;  %214 = vmatpush.msra.mxu2 %v80_v4  ;;  %v130_v31 = vld [vmem:[#allocation5 + $0x298] sm:$0xff]  ;;  %v129_v33 = vld [vmem:[#allocation5 + $0x290] sm:$0xff]  ;;  %v128_v35 = vld [vmem:[#allocation5 + $0x288] sm:$0xff] }
  0x2d   :  { %260 = vmatpush.msrb.mxu1 %v142_v58  ;;  %234 = vmatpush.msra.mxu3 %v96_v5  ;;  %v111_v36 = vld [vmem:[#allocation5 + $0x200] sm:$0xff]  ;;  %v152_v38 = vld.sshfl [vmem:[#allocation1 + $0x20] sm:$0xff pattern:$0x73625140] }
  0x2e   :  { %241 = vmatpush.msrb.mxu0 %v125_v61  ;;  %215 = vmatpush.msra.mxu2 %v79_v8  ;;  %v127_v37 = vld [vmem:[#allocation5 + $0x280] sm:$0xff]  ;;  %v153_v39 = vld.sshfl [vmem:[#allocation1 + $0x28] sm:$0xff pattern:$0x73625140]  ;;  %v310_v50 = vld [vmem:[%s428_s2] ss:$0 sm:$0xff] }
  0x2f   :  { %261 = vmatpush.msrb.mxu1 %v141_v62  ;;  %235 = vmatpush.msra.mxu3 %v95_v9 }
  0x30   :  { %242 = vmatpush.msrb.mxu0 %v124_v2  ;;  %216 = vmatmul.f32.vlgmr.msra.gmra.mxu2 %v150_v12 }
  0x31   :  { %262 = vmatpush.msrb.mxu1 %v140_v3  ;;  %236 = vmatmul.f32.vlgmr.msra.gmra.mxu3 %v151_v13 }
  0x32   :  { %243 = vmatpush.msrb.mxu0 %v123_v6  ;;  %196 = vmatmul.f32.vlgmr.msra.gmra.mxu1 %v149_v17 }
  0x33   :  { %263 = vmatpush.msrb.mxu1 %v139_v7  ;;  %176 = vmatmul.f32.vlgmr.msra.gmra.mxu0 %v148_v16 }
  0x34   :  { %244 = vmatpush.msrb.mxu0 %v122_v10 }
  0x35   :  { %264 = vmatpush.msrb.mxu1 %v138_v11 }
  0x36   :  { %245 = vmatpush.msrb.mxu0 %v121_v14 }
  0x37   :  { %265 = vmatpush.msrb.mxu1 %v137_v15 }
  0x38   :  { %246 = vmatpush.msrb.mxu0 %v120_v18 }
  0x39   :  { %266 = vmatpush.msrb.mxu1 %v136_v19 }
  0x3a   :  { %247 = vmatpush.msrb.mxu0 %v119_v20 }
  0x3b   :  { %267 = vmatpush.msrb.mxu1 %v135_v21 }
  0x3c   :  { %248 = vmatpush.msrb.mxu0 %v118_v22 }
  0x3d   :  { %268 = vmatpush.msrb.mxu1 %v134_v23 }
  0x3e   :  { %249 = vmatpush.msrb.mxu0 %v117_v24 }
  0x3f   :  { %269 = vmatpush.msrb.mxu1 %v133_v25 }
  0x40   :  { %250 = vmatpush.msrb.mxu0 %v116_v26 }
  0x41   :  { %270 = vmatpush.msrb.mxu1 %v132_v27 }
  0x42   :  { %251 = vmatpush.msrb.mxu0 %v115_v28 }
  0x43   :  { %271 = vmatpush.msrb.mxu1 %v131_v29 }
  0x44   :  { %252 = vmatpush.msrb.mxu0 %v114_v30 }
  0x45   :  { %272 = vmatpush.msrb.mxu1 %v130_v31 }
  0x46   :  { %253 = vmatpush.msrb.mxu0 %v113_v32 }
  0x47   :  { %273 = vmatpush.msrb.mxu1 %v129_v33 }
  0x48   :  { %254 = vmatpush.msrb.mxu0 %v112_v34 }
  0x49   :  { %274 = vmatpush.msrb.mxu1 %v128_v35 }
  0x4a   :  { %255 = vmatpush.msrb.mxu0 %v111_v36 }
  0x4b   :  { %275 = vmatpush.msrb.mxu1 %v127_v37  ;;  %256 = vmatmul.f32.vlgmr.msrb.gmra.mxu0 %v152_v38 }
  0x4c   :  { %276 = vmatmul.f32.vlgmr.msrb.gmra.mxu1 %v153_v39 }
  0xaf   :  { %v197_v41 = vpop.f32.mrf.mxu1 }
  0xb0   :  { %v177_v40 = vpop.f32.mrf.mxu0 }
  0xb1   :  { %v198_v42 = vadd.f32 %v197_v41, %v177_v40 }
  0xb3   :  { %v217_v43 = vpop.f32.mrf.mxu2 }
  0xb4   :  { %v218_v44 = vadd.f32 %v217_v43, %v198_v42  ;;  %v237_v45 = vpop.f32.mrf.mxu3 }
  0xb6   :  { %v238_v46 = vadd.f32 %v237_v45, %v218_v44 }
  0xc8   :  { %v257_v47 = vpop.f32.mrf.mxu0 }
  0xc9   :  { %v277_v48 = vpop.f32.mrf.mxu1  ;;  %v258_v49 = vadd.f32 %v257_v47, %v238_v46 }
  0xcb   :  { %v278_v51 = vadd.f32 %v277_v48, %v258_v49 }
  0xcd   :  { %v284_v52 = vadd.f32 %v310_v50, %v278_v51 }
  0xcf   :  { %286 = vst.msk [vmem:[#allocation7] sm:$0x3] %vm285_vm0, %v284_v52 }
  0xd0   :  { %297 = dma.vmem_to_hbm [thread:$0]  %s293_s25, 32, %s295_s28, [#allocation4]  }
  0xd1   :  { %387 = dma.done.wait [#allocation4], 32  }
  0xd2   :  { %388 = vsyncadd [#allocation4], 4294967264 }
  0xd3   :  { %302 = vsyncpa [#allocation3], 1 }
  0xd4   :  { %303 = vsyncpa [#allocation6], 1 }
  0xd5   :  { %304 = vsyncpa [#allocation4], 1 }

</bundles_post_ra>
